<compile_context>
chip_gen: v7x
topology: tpu7x:2x2x1
jax: 0.10.0
libtpu: 0.0.40
codegen_flags: <defaults>
</compile_context>

<pallas_src>
import numpy as np
import jax
import jax.numpy as jnp
from jax import lax
from jax.experimental import pallas as pl
from jax.experimental.pallas import tpu as pltpu

F32 = jnp.float32
BF16 = jnp.bfloat16
NEG_BIG = 1e12


def _softmax(x, axis=-1):
    m = jnp.max(x, axis=axis, keepdims=True)
    ex = jnp.exp(x - m)
    return ex / jnp.sum(ex, axis=axis, keepdims=True)


def _full(shape):
    """Full-array BlockSpec (grid-invariant) for a 1-D grid."""
    zeros = (0,) * len(shape)
    return pl.BlockSpec(shape, lambda i, _z=zeros: _z)


def _pick_bt(B):
    return 8 if (B > 8 and B % 8 == 0) else B


def _vmem_limit(nbytes):
    return int(min(64 * 2 ** 20, max(32 * 2 ** 20, 2 * nbytes)))


# ----------------------------------------------------------------------------
# Kernel 1: bidirectional LSTM (packed-sequence semantics via masking).
# ----------------------------------------------------------------------------
def bilstm_kernel(x_ref, lens_ref, wih_ref, whh_ref, b_ref, out_ref, gates_sc):
    T, bt, E = x_ref.shape
    H8 = gates_sc.shape[2]
    H4 = H8 // 2
    H = H4 // 4

    # Hoisted input projection: one flattened large-M bf16 MXU matmul.
    x = x_ref[...]                                            # [T, bt, E] bf16
    proj = jnp.dot(x.reshape(T * bt, E), wih_ref[...],
                   preferred_element_type=jnp.float32)        # [T*bt, 8H]
    gates_sc[...] = proj.reshape(T, bt, H8) + b_ref[...]

    lens = lens_ref[...]                                      # [bt, 1] int32
    whh = whh_ref[...]                                        # [2H, 8H] f32 (block-diag)

    def cell(g, c):
        # gate order per direction: (i, f, o, g) -> one sigmoid slab + one tanh
        sig = jax.nn.sigmoid(g[:, 0:3 * H])
        i_g = sig[:, 0:H]
        f_g = sig[:, H:2 * H]
        o_g = sig[:, 2 * H:3 * H]
        g_g = jnp.tanh(g[:, 3 * H:4 * H])
        c_new = f_g * c + i_g * g_g
        h_new = o_g * jnp.tanh(c_new)
        return h_new, c_new

    def step(t, carry):
        h_f, c_f, h_r, c_r = carry
        rt = T - 1 - t
        # single fused recurrent matmul for both directions
        rec = jnp.dot(jnp.concatenate([h_f, h_r], axis=-1), whh,
                      preferred_element_type=jnp.float32)     # [bt, 8H]
        g_f = gates_sc[t][:, 0:H4] + rec[:, 0:H4]
        g_r = gates_sc[rt][:, H4:H8] + rec[:, H4:H8]
        m_f = (lens > t).astype(jnp.float32)                  # [bt, 1]
        m_r = (lens > rt).astype(jnp.float32)

        hf_n, cf_n = cell(g_f, c_f)
        hr_n, cr_n = cell(g_r, c_r)
        out_ref[0, t] = (hf_n * m_f).astype(out_ref.dtype)    # zero on padding
        out_ref[1, rt] = (hr_n * m_r).astype(out_ref.dtype)

        h_f = m_f * hf_n + (1.0 - m_f) * h_f
        c_f = m_f * cf_n + (1.0 - m_f) * c_f
        h_r = m_r * hr_n + (1.0 - m_r) * h_r
        c_r = m_r * cr_n + (1.0 - m_r) * c_r
        return h_f, c_f, h_r, c_r

    z = jnp.zeros((bt, H), jnp.float32)
    lax.fori_loop(0, T, step, (z, z, z, z))


def bilstm(x, lens, p):
    """x: [B, T, E] f32, lens: [B] int.  Returns [B, T, 2H] bf16."""
    B, T, E = x.shape
    H = p['whh_f'].shape[0]
    bt = _pick_bt(B)
    nblk = B // bt

    xt = jnp.transpose(x, (1, 0, 2)).astype(BF16)             # [T, B, E]
    wih = jnp.concatenate([p['wih_f'], p['wih_r']], axis=1).astype(BF16)  # [E, 8H]
    whh = jnp.zeros((2 * H, 8 * H), F32)
    whh = whh.at[0:H, 0:4 * H].set(p['whh_f'])
    whh = whh.at[H:2 * H, 4 * H:8 * H].set(p['whh_r'])        # block-diagonal
    bias = jnp.concatenate([p['b_f'], p['b_r']], axis=1)      # [1, 8H]
    lens2 = jnp.asarray(lens, jnp.int32).reshape(B, 1)

    need = (T * bt * E * 2) * 2 + bt * 4 * 2
    need += (2 * T * bt * H * 2) * 2
    need += T * bt * 8 * H * 4
    need += E * 8 * H * 2 + 2 * H * 8 * H * 4 + 8 * H * 4

    out = pl.pallas_call(
        bilstm_kernel,
        out_shape=jax.ShapeDtypeStruct((2, T, B, H), BF16),
        grid=(nblk,),
        in_specs=[
            pl.BlockSpec((T, bt, E), lambda i: (0, i, 0)),
            pl.BlockSpec((bt, 1), lambda i: (i, 0)),
            _full(wih.shape),
            _full(whh.shape),
            _full(bias.shape),
        ],
        out_specs=pl.BlockSpec((2, T, bt, H), lambda i: (0, 0, i, 0)),
        scratch_shapes=[pltpu.VMEM((T, bt, 8 * H), F32)],
        compiler_params=pltpu.CompilerParams(
            dimension_semantics=("parallel",),
            vmem_limit_bytes=_vmem_limit(need)),
    )(xt, lens2, wih, whh, bias)
    # [2, T, B, H] -> [B, T, 2H]
    return jnp.transpose(jnp.concatenate([out[0], out[1]], axis=-1), (1, 0, 2))


# ----------------------------------------------------------------------------
# Kernel 2: fused sentence heads (two masked attention poolings + tanh heads).
# ----------------------------------------------------------------------------
def sen_head_kernel(outs_ref, mask_ref,
                    w12_ref, b12_ref, w11_ref,
                    w22_ref, b22_ref, w21_ref,
                    wm2_ref, bm2_ref, wv2_ref, bv2_ref,
                    pmean_ref, pvar_ref):
    bt, T, D2 = outs_ref.shape
    outs_bf = outs_ref[...]                                   # bf16 [bt, T, 2H]
    outs_f = outs_bf.astype(F32)
    mask = mask_ref[...]                                      # [bt, T]
    flat = outs_bf.reshape(bt * T, D2)                        # flattened large-M matmul

    def pool(w2_ref, b2_ref, w1_ref):
        z = jnp.tanh(jnp.dot(flat, w2_ref[...],
                             preferred_element_type=jnp.float32) + b2_ref[...])
        Hh = z.shape[1]
        s = jnp.sum(z.reshape(bt, T, Hh) * w1_ref[...][None], axis=-1)   # [bt, T]
        s = s - (1.0 - mask) * NEG_BIG
        a = _softmax(s, axis=-1)
        return jnp.sum(a[:, :, None] * outs_f, axis=1)        # [bt, 2H] f32 accum

    pooled1 = pool(w12_ref, b12_ref, w11_ref)
    pooled2 = pool(w22_ref, b22_ref, w21_ref)
    pmean_ref[...] = jnp.tanh(
        jnp.dot(pooled1, wm2_ref[...], preferred_element_type=jnp.float32)
        + bm2_ref[...])
    pvar_ref[...] = jnp.tanh(
        jnp.dot(pooled2, wv2_ref[...], preferred_element_type=jnp.float32)
        + bv2_ref[...])


def sen_heads(outs, mask, p):
    B, T, D2 = outs.shape
    H = p['mean_linear2']['w'].shape[1]
    bt = _pick_bt(B)
    nblk = B // bt

    need = (bt * T * D2 * 2 + bt * T * 4) * 2
    need += 4 * (D2 * H * 4) + 4 * bt * H * 4 * 2
    return pl.pallas_call(
        sen_head_kernel,
        out_shape=(jax.ShapeDtypeStruct((B, H), F32),
                   jax.ShapeDtypeStruct((B, H), F32)),
        grid=(nblk,),
        in_specs=[
            pl.BlockSpec((bt, T, D2), lambda i: (i, 0, 0)),
            pl.BlockSpec((bt, T), lambda i: (i, 0)),
            _full((D2, H)), _full((1, H)), _full((1, H)),
            _full((D2, H)), _full((1, H)), _full((1, H)),
            _full((D2, H)), _full((1, H)),
            _full((D2, H)), _full((1, H)),
        ],
        out_specs=(pl.BlockSpec((bt, H), lambda i: (i, 0)),
                   pl.BlockSpec((bt, H), lambda i: (i, 0))),
        compiler_params=pltpu.CompilerParams(
            dimension_semantics=("parallel",),
            vmem_limit_bytes=_vmem_limit(need)),
    )(outs, mask,
      p['sen_att12']['w'].astype(BF16), p['sen_att12']['b'], p['sen_att11']['w'],
      p['sen_att22']['w'].astype(BF16), p['sen_att22']['b'], p['sen_att21']['w'],
      p['mean_linear2']['w'], p['mean_linear2']['b'],
      p['var_linear2']['w'], p['var_linear2']['b'])


# ----------------------------------------------------------------------------
# Kernel 3: per-sentence fused aspect pooling + n_hop memory network + highway
# + final heads (sen_asp mean, glo vectors, mean/var/predict linears).
# Grid over sentences; all max_num aspect slots of a sentence processed
# together (padded slots masked out by vmask).
# ----------------------------------------------------------------------------
def hop_final_kernel(sent_ref, aouts_ref, amask_ref, vmask_ref, locs_ref,
                     aloc_ref, pm_ref, pv_ref,
                     aw2_ref, ab2_ref, aw1_ref,
                     wmem_ref, wasp_ref, we_ref,
                     wo_ref, bo_ref, wt_ref, bt_ref,
                     wm1a_ref, wm1b_ref, bm1_ref,
                     wv1a_ref, wv1b_ref, bv1_ref,
                     wpm_ref, wpv_ref, wpg1_ref, wpg2_ref, bp_ref,
                     pmean_ref, pvar_ref, pred_ref):
    n_hop = wo_ref.shape[0]
    N, Ta, D2 = aouts_ref.shape[1], aouts_ref.shape[2], aouts_ref.shape[3]
    H = wo_ref.shape[2]

    sent = sent_ref[0].astype(F32)                            # [T_s, 2H]
    aouts = aouts_ref[0]                                      # [N, Ta, 2H] bf16
    amask = amask_ref[0]                                      # [N, Ta]
    v = vmask_ref[0]                                          # [N, 1] valid-aspect mask
    locs = locs_ref[0]                                        # [n_hop, N, T_s]
    aloc = aloc_ref[0]                                        # [N, N]
    pm = pm_ref[0]                                            # [1, H]
    pv = pv_ref[0]

    # --- aspect attention pooling (flattened, M = N*Ta) -----------------------
    aflat = aouts.reshape(N * Ta, D2)
    z = jnp.tanh(jnp.dot(aflat, aw2_ref[...],
                         preferred_element_type=jnp.float32) + ab2_ref[...])
    s = jnp.sum(z.reshape(N, Ta, H) * aw1_ref[...][None], axis=-1)       # [N, Ta]
    s = s - (1.0 - amask) * NEG_BIG
    a = _softmax(s, axis=-1)
    asp = jnp.sum(a[:, :, None] * aouts.astype(F32), axis=1)             # [N, 2H]

    # --- multi-hop memory network + highway update ----------------------------
    e = jnp.zeros((N, H), F32)
    for h in range(n_hop):                                    # static unroll
        loc = locs[h]                                         # [N, T_s]
        memory = sent[None, :, :] * loc[:, :, None]           # [N, T_s, 2H]
        s_mem = jnp.sum(memory * wmem_ref[h][None], axis=-1)  # [N, T_s]
        s_row = (jnp.sum(asp * wasp_ref[h], axis=-1, keepdims=True)
                 + jnp.sum(e * we_ref[h], axis=-1, keepdims=True))       # [N, 1]
        # matches reference: score = w_mem.(sent*loc) + loc*(w_asp.asp + w_e.e)
        sc = s_mem + loc * s_row - (1.0 - loc) * NEG_BIG
        att = _softmax(sc, axis=-1)
        i_AL = jnp.sum(att[:, :, None] * memory, axis=1)      # [N, 2H]
        out = jnp.dot(i_AL, wo_ref[h],
                      preferred_element_type=jnp.float32) + bo_ref[h]    # [N, H]
        tg = jax.nn.sigmoid(jnp.dot(e, wt_ref[h],
                                    preferred_element_type=jnp.float32) + bt_ref[h])
        e = out * tg + e * (1.0 - tg)

    # --- fused final heads (all per-sentence local) ----------------------------
    e_v = e * v                                               # zero padded slots
    n_i = jnp.sum(v, axis=0, keepdims=True)                   # [1, 1]
    sen_asp = jnp.sum(e_v, axis=0, keepdims=True) / n_i       # [1, H]

    pmean_ref[0] = (jnp.dot(pm, wm1a_ref[...], preferred_element_type=jnp.float32)
                    + jnp.dot(sen_asp, wm1b_ref[...],
                              preferred_element_type=jnp.float32)
                    + bm1_ref[...])
    pvar_ref[0] = (jnp.dot(pv, wv1a_ref[...], preferred_element_type=jnp.float32)
                   + jnp.dot(sen_asp, wv1b_ref[...],
                             preferred_element_type=jnp.float32)
                   + bv1_ref[...])

    # glo_vec (aspect_attention softmax over its size-1 output dim is == 1):
    #   glo1[j] = sum_k loc[j,k]*e[k] ; glo2[j] = e[j]*sum_k loc[j,k]
    glo1 = jnp.dot(aloc, e_v, preferred_element_type=jnp.float32)        # [N, H]
    rs = jnp.dot(aloc, v, preferred_element_type=jnp.float32)            # [N, 1]
    glo2 = e * rs
    base = (jnp.dot(pm, wpm_ref[...], preferred_element_type=jnp.float32)
            + jnp.dot(pv, wpv_ref[...], preferred_element_type=jnp.float32)
            + bp_ref[...])                                               # [1, 3]
    pred_ref[0] = (base
                   + jnp.dot(glo1, wpg1_ref[...], preferred_element_type=jnp.float32)
                   + jnp.dot(glo2, wpg2_ref[...], preferred_element_type=jnp.float32))


def memory_hops_and_heads(sent_outs, aspect_outs, amask, vmask, locs, aloc,
                          pmean_vec, pvar_vec, params, n_hop, H):
    B, T_s, D2 = sent_outs.shape
    _, N, T_a, _ = aspect_outs.shape

    wa_all = jnp.stack([params['attention'][h]['w'] for h in range(n_hop)], 0)
    w_mem = wa_all[:, :, 0:D2]                                # [n_hop, 1, 2H]
    w_asp = wa_all[:, :, D2:2 * D2]
    w_e = wa_all[:, :, 2 * D2:]                               # [n_hop, 1, H]
    wo_all = jnp.stack([params['output'][h]['w'] for h in range(n_hop)], 0)
    bo_all = jnp.stack([params['output'][h]['b'] for h in range(n_hop)], 0)
    wt_all = jnp.stack([params['transform'][h]['w'] for h in range(n_hop)], 0)
    bt_all = jnp.stack([params['transform'][h]['b'] for h in range(n_hop)], 0)
    wm1 = params['mean_linear1']['w']
    wv1 = params['var_linear1']['w']
    wp = params['predict']['w']

    pm3 = pmean_vec.reshape(B, 1, H)
    pv3 = pvar_vec.reshape(B, 1, H)

    pmean, pvar, pred = pl.pallas_call(
        hop_final_kernel,
        out_shape=(jax.ShapeDtypeStruct((B, 1, 2), F32),
                   jax.ShapeDtypeStruct((B, 1, 2), F32),
                   jax.ShapeDtypeStruct((B, N, 3), F32)),
        grid=(B,),
        in_specs=[
            pl.BlockSpec((1, T_s, D2), lambda i: (i, 0, 0)),
            pl.BlockSpec((1, N, T_a, D2), lambda i: (i, 0, 0, 0)),
            pl.BlockSpec((1, N, T_a), lambda i: (i, 0, 0)),
            pl.BlockSpec((1, N, 1), lambda i: (i, 0, 0)),
            pl.BlockSpec((1, n_hop, N, T_s), lambda i: (i, 0, 0, 0)),
            pl.BlockSpec((1, N, N), lambda i: (i, 0, 0)),
            pl.BlockSpec((1, 1, H), lambda i: (i, 0, 0)),
            pl.BlockSpec((1, 1, H), lambda i: (i, 0, 0)),
            _full((D2, H)), _full((1, H)), _full((1, H)),
            _full((n_hop, 1, D2)), _full((n_hop, 1, D2)), _full((n_hop, 1, H)),
            _full((n_hop, D2, H)), _full((n_hop, 1, H)),
            _full((n_hop, H, H)), _full((n_hop, 1, H)),
            _full((H, 2)), _full((H, 2)), _full((1, 2)),
            _full((H, 2)), _full((H, 2)), _full((1, 2)),
            _full((H, 3)), _full((H, 3)), _full((H, 3)), _full((H, 3)),
            _full((1, 3)),
        ],
        out_specs=(pl.BlockSpec((1, 1, 2), lambda i: (i, 0, 0)),
                   pl.BlockSpec((1, 1, 2), lambda i: (i, 0, 0)),
                   pl.BlockSpec((1, N, 3), lambda i: (i, 0, 0))),
        compiler_params=pltpu.CompilerParams(
            dimension_semantics=("parallel",)),
    )(sent_outs, aspect_outs, amask, vmask, locs, aloc, pm3, pv3,
      params['asp_att2']['w'].astype(BF16), params['asp_att2']['b'],
      params['asp_att1']['w'],
      w_mem, w_asp, w_e,
      wo_all, bo_all, wt_all, bt_all,
      wm1[0:H], wm1[H:2 * H], params['mean_linear1']['b'],
      wv1[0:H], wv1[H:2 * H], params['var_linear1']['b'],
      wp[0:H], wp[H:2 * H], wp[2 * H:3 * H], wp[3 * H:4 * H],
      params['predict']['b'])
    return pmean.reshape(B, 2), pvar.reshape(B, 2), pred


# ----------------------------------------------------------------------------
# parameters (deterministic synthetic init; shapes match the PyTorch module)
# ----------------------------------------------------------------------------
def glorot(key, shape):
    fan_in, fan_out = shape[0], shape[-1]
    lim = float(np.sqrt(6.0 / (fan_in + fan_out)))
    return jax.random.uniform(key, shape, F32, -lim, lim)


def init_params(key, V, E, H, n_hop):
    ks = iter(jax.random.split(key, 64))

    def nk():
        return next(ks)

    def lin(i, o):
        return {'w': glorot(nk(), (i, o)), 'b': jnp.zeros((1, o), F32)}

    def att_vec(i):
        # Linear(i -> 1) scorer as a [1, i] row vector; its bias is zero-init
        # and softmax-invariant, so it is omitted.
        return {'w': glorot(nk(), (1, i))}

    def lstm():
        # internal gate order: (i, f, o, g); forget bias 1 (b_ih) + 1 (b_hh) = 2
        b = np.zeros((1, 4 * H), np.float32)
        b[:, H:2 * H] = 2.0
        return {'wih_f': glorot(nk(), (E, 4 * H)),
                'whh_f': glorot(nk(), (H, 4 * H)),
                'b_f': jnp.asarray(b),
                'wih_r': glorot(nk(), (E, 4 * H)),
                'whh_r': glorot(nk(), (H, 4 * H)),
                'b_r': jnp.asarray(b)}

    p = {}
    p['emb'] = jax.random.normal(nk(), (V, E), F32) * 0.1
    p['sen_lstm'] = lstm()
    p['asp_lstm'] = lstm()
    p['sen_att12'] = lin(2 * H, H)
    p['sen_att11'] = att_vec(H)
    p['sen_att22'] = lin(2 * H, H)
    p['sen_att21'] = att_vec(H)
    p['asp_att2'] = lin(2 * H, H)
    p['asp_att1'] = att_vec(H)
    p['mean_linear2'] = lin(2 * H, H)
    p['var_linear2'] = lin(2 * H, H)
    p['mean_linear1'] = lin(2 * H, 2)
    p['var_linear1'] = lin(2 * H, 2)
    p['attention'] = [att_vec(5 * H) for _ in range(n_hop)]
    p['output'] = [lin(2 * H, H) for _ in range(n_hop)]
    p['transform'] = [lin(H, H) for _ in range(n_hop)]
    p['predict'] = lin(4 * H, 3)
    # aspect_attention (2H -> 1): softmax over its size-1 output is identically
    # 1, so it has no numerical effect and is not instantiated.
    return p


# ----------------------------------------------------------------------------
# forward
# ----------------------------------------------------------------------------
def soft_cross_entropy(logits, target):
    logp = jax.nn.log_softmax(logits, axis=1)
    return jnp.sum(-target * logp, axis=1)


def dmmn_sdcm_forward(params, data, H, n_hop):
    sentences = jnp.asarray(data['sentences'], jnp.int32)
    mean = jnp.asarray(data['mean'], F32)
    var = jnp.asarray(data['var'], F32)
    num = [int(x) for x in data['num']]
    sentence_lens = np.asarray(data['sentence_lens'], np.int32)
    aspects_np = np.asarray(data['aspects'])
    aspect_lens_np = np.asarray(data['aspect_lens'], np.int32)
    sentence_locs_np = np.asarray(data['sentence_locs'], np.float32)
    aspect_locs_np = np.asarray(data['aspect_locs'], np.float32)
    labels_np = np.asarray(data['labels'], np.float32)

    B, T_s = sentences.shape
    max_num, T_a = aspects_np.shape[1], aspects_np.shape[2]
    total_num = int(sum(num))

    # --- sentence branch ------------------------------------------------------
    sent_inputs = params['emb'][sentences]                        # [B, T_s, E]
    sentence_outputs = bilstm(sent_inputs, sentence_lens,
                              params['sen_lstm'])                 # bf16 [B, T_s, 2H]
    sent_mask = (jnp.arange(T_s)[None, :]
                 < jnp.asarray(sentence_lens)[:, None]).astype(F32)
    pmean_vec, pvar_vec = sen_heads(sentence_outputs, sent_mask, params)

    # --- aspect branch (all B*max_num slots; pad slots masked downstream) -----
    aspects = jnp.asarray(aspects_np, jnp.int32).reshape(B * max_num, T_a)
    alens = aspect_lens_np.reshape(B * max_num)
    asp_inputs = params['emb'][aspects]                           # [B*max_num, T_a, E]
    aspect_outputs = bilstm(asp_inputs, alens, params['asp_lstm'])
    aspect_outputs = aspect_outputs.reshape(B, max_num, T_a, 2 * H)
    amask = (jnp.arange(T_a)[None, :]
             < jnp.asarray(alens)[:, None]).astype(F32).reshape(B, max_num, T_a)
    vmask_np = (np.arange(max_num)[None, :]
                < np.asarray(num)[:, None]).astype(np.float32)
    vmask = jnp.asarray(vmask_np).reshape(B, max_num, 1)
    locs = jnp.asarray(np.transpose(sentence_locs_np[:, :, :, :T_s],
                                    (0, 2, 1, 3)))                # [B, n_hop, max_num, T_s]
    aloc = jnp.asarray(aspect_locs_np)                            # [B, max_num, max_num]

    # --- fused aspect pooling + memory hops + final heads (grid over sentences)
    pmean, pvar, predict_all = memory_hops_and_heads(
        sentence_outputs, aspect_outputs, amask, vmask, locs, aloc,
        pmean_vec, pvar_vec, params, n_hop, H)

    # --- gather valid aspect rows + losses (tiny scalar work: plain XLA) ------
    valid_idx = np.concatenate(
        [i * max_num + np.arange(num[i]) for i in range(B)]).astype(np.int32)
    predict = predict_all.reshape(B * max_num, 3)[jnp.asarray(valid_idx)]
    spec_labels = jnp.asarray(
        np.concatenate([labels_np[i, :num[i]] for i in range(B)], 0), F32)

    sentence_cost = jnp.mean(soft_cross_entropy(pmean, mean)
                             + soft_cross_entropy(pvar, var))
    pred_labels = jnp.argmax(predict, axis=1)
    true_labels = jnp.argmax(spec_labels, axis=1)
    correct_num = jnp.sum(pred_labels == true_labels)
    logp = jax.nn.log_softmax(predict, axis=1)
    cost = -jnp.mean(jnp.take_along_axis(logp, true_labels[:, None], axis=1)[:, 0])
    return cost, sentence_cost, total_num, correct_num, pred_labels, true_labels


# ----------------------------------------------------------------------------
if __name__ == "__main__":
    V, E, H, n_hop = 50, 16, 16, 2
    B, T_s, T_a, max_num = 2, 8, 4, 2

    key = jax.random.PRNGKey(0)
    k_param, k_sent, k_asp, k_mean, k_var, k_lab = jax.random.split(key, 6)

    params = init_params(k_param, V, E, H, n_hop)

    num = [2, 1]
    sentence_lens = np.array([8, 5], np.int32)          # max == T_s
    aspect_lens = np.array([[4, 2], [3, 1]], np.int32)

    sentences = np.asarray(jax.random.randint(k_sent, (B, T_s), 1, V))
    aspects = np.asarray(jax.random.randint(k_asp, (B, max_num, T_a), 1, V))
    mean = np.asarray(jax.nn.softmax(jax.random.normal(k_mean, (B, 2)), axis=1))
    var = np.asarray(jax.nn.softmax(jax.random.normal(k_var, (B, 2)), axis=1))

    lab_idx = np.asarray(jax.random.randint(k_lab, (B, max_num), 0, 3))
    labels = np.zeros((B, max_num, 3), np.float32)
    for i in range(B):
        for j in range(max_num):
            labels[i, j, lab_idx[i, j]] = 1.0

    sentence_locs = np.zeros((B, max_num, n_hop, T_s), np.float32)
    for i in range(B):
        sentence_locs[i, :, :, :sentence_lens[i]] = 1.0
    aspect_locs = np.ones((B, max_num, max_num), np.float32)

    data = dict(sentences=sentences, mean=mean, var=var, num=num,
                sentence_lens=sentence_lens, aspects=aspects,
                aspect_lens=aspect_lens, sentence_locs=sentence_locs,
                aspect_locs=aspect_locs, labels=labels)

    (cost, sentence_cost, total_num, correct_num,
     pred_labels, true_labels) = dmmn_sdcm_forward(params, data, H, n_hop)

    jax.block_until_ready((cost, sentence_cost, correct_num,
                           pred_labels, true_labels))
    print("KERNEL_OK")
</pallas_src>

<mosaic_0001>
module attributes {stable_mosaic.version = 11 : i64} {
  func.func @bilstm_kernel(%arg0: i32, %arg1: memref<8x2x16xbf16, #tpu.memory_space<vmem>>, %arg2: memref<2x1xi32, #tpu.memory_space<vmem>>, %arg3: memref<16x128xbf16, #tpu.memory_space<vmem>>, %arg4: memref<32x128xf32, #tpu.memory_space<vmem>>, %arg5: memref<1x128xf32, #tpu.memory_space<vmem>>, %arg6: memref<2x8x2x16xbf16, #tpu.memory_space<vmem>>, %arg7: memref<8x2x128xf32, #tpu.memory_space<vmem>>) attributes {dimension_semantics = [#tpu.dimension_semantics<parallel>], iteration_bounds = array<i64: 1>, scalar_prefetch = 0 : i64, scratch_operands = 1 : i64, tpu.core_type = #tpu.core_type<tc>, window_params = [{transform_indices = @transform_0, window_bounds = array<i64: 8, 2, 16>}, {transform_indices = @transform_1, window_bounds = array<i64: 2, 1>}, {pipeline_mode = #tpu.pipeline_mode<synchronous>, transform_indices = @transform_2, window_bounds = array<i64: 16, 128>}, {pipeline_mode = #tpu.pipeline_mode<synchronous>, transform_indices = @transform_3, window_bounds = array<i64: 32, 128>}, {pipeline_mode = #tpu.pipeline_mode<synchronous>, transform_indices = @transform_4, window_bounds = array<i64: 1, 128>}, {transform_indices = @transform_5, window_bounds = array<i64: 2, 8, 2, 16>}]} {
    %c0 = arith.constant 0 : index
    %c0_0 = arith.constant 0 : index
    %c0_1 = arith.constant 0 : index
    %0 = vector.load %arg1[%c0, %c0_0, %c0_1] : memref<8x2x16xbf16, #tpu.memory_space<vmem>>, vector<8x2x16xbf16>
    %1 = vector.shape_cast %0 : vector<8x2x16xbf16> to vector<16x16xbf16>
    %c0_2 = arith.constant 0 : index
    %c0_3 = arith.constant 0 : index
    %2 = vector.load %arg3[%c0_2, %c0_3] : memref<16x128xbf16, #tpu.memory_space<vmem>>, vector<16x128xbf16>
    %cst = arith.constant dense<0.000000e+00> : vector<16x128xf32>
    %3 = tpu.matmul %1, %2, %cst {dimension_numbers = #tpu.dot_dimension_numbers<[1], [0], [0], [1], [0, 0, 1, 1], [], []>} : vector<16x16xbf16>, vector<16x128xbf16>, vector<16x128xf32> -> vector<16x128xf32>
    %4 = vector.shape_cast %3 : vector<16x128xf32> to vector<8x2x128xf32>
    %c0_4 = arith.constant 0 : index
    %c0_5 = arith.constant 0 : index
    %5 = vector.load %arg5[%c0_4, %c0_5] : memref<1x128xf32, #tpu.memory_space<vmem>>, vector<1x128xf32>
    %6 = vector.shape_cast %5 : vector<1x128xf32> to vector<1x1x128xf32>
    %7 = vector.broadcast %6 : vector<1x1x128xf32> to vector<8x2x128xf32>
    %8 = arith.addf %4, %7 : vector<8x2x128xf32>
    %c0_6 = arith.constant 0 : index
    %c0_7 = arith.constant 0 : index
    %c0_8 = arith.constant 0 : index
    %9 = vector.load %arg7[%c0_6, %c0_7, %c0_8] : memref<8x2x128xf32, #tpu.memory_space<vmem>>, vector<8x2x128xf32>
    tpu.vector_store %arg7[%c0_6, %c0_7, %c0_8], %8 {strides = array<i32>} : memref<8x2x128xf32, #tpu.memory_space<vmem>>, vector<8x2x128xf32>,
    %c0_9 = arith.constant 0 : index
    %c0_10 = arith.constant 0 : index
    %10 = vector.load %arg2[%c0_9, %c0_10] : memref<2x1xi32, #tpu.memory_space<vmem>>, vector<2x1xi32>
    %c0_11 = arith.constant 0 : index
    %c0_12 = arith.constant 0 : index
    %11 = vector.load %arg4[%c0_11, %c0_12] : memref<32x128xf32, #tpu.memory_space<vmem>>, vector<32x128xf32>
    %cst_13 = arith.constant 0.000000e+00 : f32
    %12 = vector.broadcast %cst_13 : f32 to vector<2x16xf32>
    %c0_i32 = arith.constant 0 : i32
    %c8_i32 = arith.constant 8 : i32
    %13 = arith.addi %c0_i32, %c8_i32 : i32
    %c1_i32 = arith.constant 1 : i32
    %14:4 = scf.for %arg8 = %c0_i32 to %13 step %c1_i32 iter_args(%arg9 = %12, %arg10 = %12, %arg11 = %12, %arg12 = %12) -> (vector<2x16xf32>, vector<2x16xf32>, vector<2x16xf32>, vector<2x16xf32>)  : i32 {
      %c7_i32 = arith.constant 7 : i32
      %15 = arith.subi %c7_i32, %arg8 : i32
      %16 = tpu.concatenate %arg9, %arg11 in 1 : vector<2x16xf32>, vector<2x16xf32> -> vector<2x32xf32>
      %cst_15 = arith.constant dense<0.000000e+00> : vector<2x128xf32>
      %17 = tpu.matmul %16, %11, %cst_15 {dimension_numbers = #tpu.dot_dimension_numbers<[1], [0], [0], [1], [0, 0, 1, 1], [], []>} : vector<2x32xf32>, vector<32x128xf32>, vector<2x128xf32> -> vector<2x128xf32>
      %18 = arith.index_cast %arg8 : i32 to index
      %c0_16 = arith.constant 0 : index
      %c0_17 = arith.constant 0 : index
      %19 = vector.load %arg7[%18, %c0_16, %c0_17] : memref<8x2x128xf32, #tpu.memory_space<vmem>>, vector<1x2x128xf32>
      %20 = vector.shape_cast %19 : vector<1x2x128xf32> to vector<2x128xf32>
      %21 = vector.extract_strided_slice %20 {offsets = [0, 0], sizes = [2, 64], strides = [1, 1]} : vector<2x128xf32> to vector<2x64xf32>
      %22 = vector.extract_strided_slice %17 {offsets = [0, 0], sizes = [2, 64], strides = [1, 1]} : vector<2x128xf32> to vector<2x64xf32>
      %23 = arith.addf %21, %22 : vector<2x64xf32>
      %24 = arith.index_cast %15 : i32 to index
      %c0_18 = arith.constant 0 : index
      %c0_19 = arith.constant 0 : index
      %25 = vector.load %arg7[%24, %c0_18, %c0_19] : memref<8x2x128xf32, #tpu.memory_space<vmem>>, vector<1x2x128xf32>
      %26 = vector.shape_cast %25 : vector<1x2x128xf32> to vector<2x128xf32>
      %27 = vector.extract_strided_slice %26 {offsets = [0, 64], sizes = [2, 64], strides = [1, 1]} : vector<2x128xf32> to vector<2x64xf32>
      %28 = vector.extract_strided_slice %17 {offsets = [0, 64], sizes = [2, 64], strides = [1, 1]} : vector<2x128xf32> to vector<2x64xf32>
      %29 = arith.addf %27, %28 : vector<2x64xf32>
      %30 = vector.broadcast %arg8 : i32 to vector<2x1xi32>
      %31 = arith.cmpi sgt, %10, %30 : vector<2x1xi32>
      %32 = arith.extui %31 : vector<2x1xi1> to vector<2x1xi32>
      %33 = arith.sitofp %32 : vector<2x1xi32> to vector<2x1xf32>
      %34 = vector.broadcast %15 : i32 to vector<2x1xi32>
      %35 = arith.cmpi sgt, %10, %34 : vector<2x1xi32>
      %36 = arith.extui %35 : vector<2x1xi1> to vector<2x1xi32>
      %37 = arith.sitofp %36 : vector<2x1xi32> to vector<2x1xf32>
      %38 = vector.extract_strided_slice %23 {offsets = [0, 0], sizes = [2, 48], strides = [1, 1]} : vector<2x64xf32> to vector<2x48xf32>
      %39 = arith.negf %38 : vector<2x48xf32>
      %40 = math.exp %39 : vector<2x48xf32>
      %cst_20 = arith.constant 1.000000e+00 : f32
      %41 = vector.broadcast %cst_20 : f32 to vector<2x48xf32>
      %42 = arith.addf %41, %40 : vector<2x48xf32>
      %43 = arith.divf %41, %42 : vector<2x48xf32>
      %44 = vector.extract_strided_slice %43 {offsets = [0, 0], sizes = [2, 16], strides = [1, 1]} : vector<2x48xf32> to vector<2x16xf32>
      %45 = vector.extract_strided_slice %43 {offsets = [0, 16], sizes = [2, 16], strides = [1, 1]} : vector<2x48xf32> to vector<2x16xf32>
      %46 = vector.extract_strided_slice %43 {offsets = [0, 32], sizes = [2, 16], strides = [1, 1]} : vector<2x48xf32> to vector<2x16xf32>
      %47 = vector.extract_strided_slice %23 {offsets = [0, 48], sizes = [2, 16], strides = [1, 1]} : vector<2x64xf32> to vector<2x16xf32>
      %48 = math.tanh %47 : vector<2x16xf32>
      %49 = arith.mulf %45, %arg10 : vector<2x16xf32>
      %50 = arith.mulf %44, %48 : vector<2x16xf32>
      %51 = arith.addf %49, %50 : vector<2x16xf32>
      %52 = math.tanh %51 : vector<2x16xf32>
      %53 = arith.mulf %46, %52 : vector<2x16xf32>
      %54 = vector.extract_strided_slice %29 {offsets = [0, 0], sizes = [2, 48], strides = [1, 1]} : vector<2x64xf32> to vector<2x48xf32>
      %55 = arith.negf %54 : vector<2x48xf32>
      %56 = math.exp %55 : vector<2x48xf32>
      %cst_21 = arith.constant 1.000000e+00 : f32
      %57 = vector.broadcast %cst_21 : f32 to vector<2x48xf32>
      %58 = arith.addf %57, %56 : vector<2x48xf32>
      %59 = arith.divf %57, %58 : vector<2x48xf32>
      %60 = vector.extract_strided_slice %59 {offsets = [0, 0], sizes = [2, 16], strides = [1, 1]} : vector<2x48xf32> to vector<2x16xf32>
      %61 = vector.extract_strided_slice %59 {offsets = [0, 16], sizes = [2, 16], strides = [1, 1]} : vector<2x48xf32> to vector<2x16xf32>
      %62 = vector.extract_strided_slice %59 {offsets = [0, 32], sizes = [2, 16], strides = [1, 1]} : vector<2x48xf32> to vector<2x16xf32>
      %63 = vector.extract_strided_slice %29 {offsets = [0, 48], sizes = [2, 16], strides = [1, 1]} : vector<2x64xf32> to vector<2x16xf32>
      %64 = math.tanh %63 : vector<2x16xf32>
      %65 = arith.mulf %61, %arg12 : vector<2x16xf32>
      %66 = arith.mulf %60, %64 : vector<2x16xf32>
      %67 = arith.addf %65, %66 : vector<2x16xf32>
      %68 = math.tanh %67 : vector<2x16xf32>
      %69 = arith.mulf %62, %68 : vector<2x16xf32>
      %70 = vector.broadcast %33 : vector<2x1xf32> to vector<2x16xf32>
      %71 = arith.mulf %53, %70 : vector<2x16xf32>
      %72 = arith.truncf %71 : vector<2x16xf32> to vector<2x16xbf16>
      %c0_22 = arith.constant 0 : index
      %73 = arith.index_cast %arg8 : i32 to index
      %c0_23 = arith.constant 0 : index
      %c0_24 = arith.constant 0 : index
      %74 = vector.load %arg6[%c0_22, %73, %c0_23, %c0_24] : memref<2x8x2x16xbf16, #tpu.memory_space<vmem>>, vector<1x1x2x16xbf16>
      %75 = vector.shape_cast %74 : vector<1x1x2x16xbf16> to vector<2x16xbf16>
      %76 = vector.shape_cast %72 : vector<2x16xbf16> to vector<1x1x2x16xbf16>
      tpu.vector_store %arg6[%c0_22, %73, %c0_23, %c0_24], %76 {strides = array<i32>} : memref<2x8x2x16xbf16, #tpu.memory_space<vmem>>, vector<1x1x2x16xbf16>,
      %77 = vector.broadcast %37 : vector<2x1xf32> to vector<2x16xf32>
      %78 = arith.mulf %69, %77 : vector<2x16xf32>
      %79 = arith.truncf %78 : vector<2x16xf32> to vector<2x16xbf16>
      %c1 = arith.constant 1 : index
      %80 = arith.index_cast %15 : i32 to index
      %c0_25 = arith.constant 0 : index
      %c0_26 = arith.constant 0 : index
      %81 = vector.load %arg6[%c1, %80, %c0_25, %c0_26] : memref<2x8x2x16xbf16, #tpu.memory_space<vmem>>, vector<1x1x2x16xbf16>
      %82 = vector.shape_cast %81 : vector<1x1x2x16xbf16> to vector<2x16xbf16>
      %83 = vector.shape_cast %79 : vector<2x16xbf16> to vector<1x1x2x16xbf16>
      tpu.vector_store %arg6[%c1, %80, %c0_25, %c0_26], %83 {strides = array<i32>} : memref<2x8x2x16xbf16, #tpu.memory_space<vmem>>, vector<1x1x2x16xbf16>,
      %84 = vector.broadcast %33 : vector<2x1xf32> to vector<2x16xf32>
      %85 = arith.mulf %84, %53 : vector<2x16xf32>
      %cst_27 = arith.constant 1.000000e+00 : f32
      %86 = vector.broadcast %cst_27 : f32 to vector<2x1xf32>
      %87 = arith.subf %86, %33 : vector<2x1xf32>
      %88 = vector.broadcast %87 : vector<2x1xf32> to vector<2x16xf32>
      %89 = arith.mulf %88, %arg9 : vector<2x16xf32>
      %90 = arith.addf %85, %89 : vector<2x16xf32>
      %91 = vector.broadcast %33 : vector<2x1xf32> to vector<2x16xf32>
      %92 = arith.mulf %91, %51 : vector<2x16xf32>
      %cst_28 = arith.constant 1.000000e+00 : f32
      %93 = vector.broadcast %cst_28 : f32 to vector<2x1xf32>
      %94 = arith.subf %93, %33 : vector<2x1xf32>
      %95 = vector.broadcast %94 : vector<2x1xf32> to vector<2x16xf32>
      %96 = arith.mulf %95, %arg10 : vector<2x16xf32>
      %97 = arith.addf %92, %96 : vector<2x16xf32>
      %98 = vector.broadcast %37 : vector<2x1xf32> to vector<2x16xf32>
      %99 = arith.mulf %98, %69 : vector<2x16xf32>
      %cst_29 = arith.constant 1.000000e+00 : f32
      %100 = vector.broadcast %cst_29 : f32 to vector<2x1xf32>
      %101 = arith.subf %100, %37 : vector<2x1xf32>
      %102 = vector.broadcast %101 : vector<2x1xf32> to vector<2x16xf32>
      %103 = arith.mulf %102, %arg11 : vector<2x16xf32>
      %104 = arith.addf %99, %103 : vector<2x16xf32>
      %105 = vector.broadcast %37 : vector<2x1xf32> to vector<2x16xf32>
      %106 = arith.mulf %105, %67 : vector<2x16xf32>
      %cst_30 = arith.constant 1.000000e+00 : f32
      %107 = vector.broadcast %cst_30 : f32 to vector<2x1xf32>
      %108 = arith.subf %107, %37 : vector<2x1xf32>
      %109 = vector.broadcast %108 : vector<2x1xf32> to vector<2x16xf32>
      %110 = arith.mulf %109, %arg12 : vector<2x16xf32>
      %111 = arith.addf %106, %110 : vector<2x16xf32>
      scf.yield %90, %97, %104, %111 : vector<2x16xf32>, vector<2x16xf32>, vector<2x16xf32>, vector<2x16xf32>
    }
    %c8_i32_14 = arith.constant 8 : i32
    return
  }
  func.func @transform_0(%arg0: i32) -> (i32, i32, i32) {
    %c0_i32 = arith.constant 0 : i32
    %c0_i32_0 = arith.constant 0 : i32
    %c0_i32_1 = arith.constant 0 : i32
    return %c0_i32, %arg0, %c0_i32_0 : i32, i32, i32
  }
  func.func @transform_1(%arg0: i32) -> (i32, i32) {
    %c0_i32 = arith.constant 0 : i32
    %c0_i32_0 = arith.constant 0 : i32
    return %arg0, %c0_i32 : i32, i32
  }
  func.func @transform_2(%arg0: i32) -> (i32, i32) {
    %c0_i32 = arith.constant 0 : i32
    %c0_i32_0 = arith.constant 0 : i32
    %c0_i32_1 = arith.constant 0 : i32
    return %c0_i32, %c0_i32_0 : i32, i32
  }
  func.func @transform_3(%arg0: i32) -> (i32, i32) {
    %c0_i32 = arith.constant 0 : i32
    %c0_i32_0 = arith.constant 0 : i32
    %c0_i32_1 = arith.constant 0 : i32
    return %c0_i32, %c0_i32_0 : i32, i32
  }
  func.func @transform_4(%arg0: i32) -> (i32, i32) {
    %c0_i32 = arith.constant 0 : i32
    %c0_i32_0 = arith.constant 0 : i32
    %c0_i32_1 = arith.constant 0 : i32
    return %c0_i32, %c0_i32_0 : i32, i32
  }
  func.func @transform_5(%arg0: i32) -> (i32, i32, i32, i32) {
    %c0_i32 = arith.constant 0 : i32
    %c0_i32_0 = arith.constant 0 : i32
    %c0_i32_1 = arith.constant 0 : i32
    %c0_i32_2 = arith.constant 0 : i32
    return %c0_i32, %c0_i32_0, %arg0, %c0_i32_1 : i32, i32, i32, i32
  }
}

</mosaic_0001>

<bundles_post_ra>
// kernel: tpu_custom_call.1
= control target key start
LH: loop header
LB: loop body
LE: loop exit
PB: predicated region body
PF: predicated region fallthrough
CT: control target
= control target key end

     0   :  { %10 = vsyncpa [#allocation4], 0  ;;  %s941_s0 = inlined_call_operand.hbm [shape: bf16[8,2,16], index: 0, kind: input, shape index: {}]   ;;  %s942_s1 = inlined_call_operand.vmem [shape: s32[2,1], index: 1, kind: input, shape index: {}]   ;;  %s943_s2 = inlined_call_operand.vmem [shape: bf16[16,128], index: 2, kind: input, shape index: {}]   ;;  %s944_s3 = inlined_call_operand.hbm [shape: f32[32,128], index: 3, kind: input, shape index: {}]   ;;  %s945_s4 = inlined_call_operand.vmem [shape: f32[1,128], index: 4, kind: input, shape index: {}]   ;;  %s946_s5 = inlined_call_operand.hbm [shape: bf16[2,8,2,16], index: 5, kind: output, shape index: {}]  }
   0x1   :  { %11 = vsyncpa [#allocation7], 0 }
   0x2   :  { %12 = vsyncpa [#allocation5], 0  ;;  %s755_s18 = smov [#allocation3]   ;;  %s643_s22 = scalar_lea.hbm %s941_s0, 128 }
   0x3   :  { %s18_s19 = sshll.u32 %s755_s18, 4  ;;  %p644_p0 = scmp.ne.s32.totalorder %s941_s0, %s643_s22  ;;  %s19_s19 = int_to_ptr.vmem [resolvable:$true] %s18_s19 }
   0x4   :  { %p647_p1 = scmp.lt.u32.totalorder %s643_s22, %s941_s0 }
   0x6   :  { %p649_p2 = pnand %p647_p1, %p644_p0 }
   0x8   :  { %652 = shalt.err (!%p649_p2)
}
   0x9   :  { %s653_s27 = scalar_lea.vmem %s19_s19, 128  ;;  %p658_p4 = scmp.lt.s32.totalorder %s19_s19, %s19_s19 }
   0xa   :  { %p654_p3 = scmp.ne.s32.totalorder %s19_s19, %s653_s27  ;;  %p659_p5 = scmp.lt.s32.totalorder %s653_s27, %s653_s27 }
   0xc   :  { %p660_p6 = por %p659_p5, %p658_p4 }
   0xe   :  { %p661_p7 = pnand %p660_p6, %p654_p3 }
  0x10   :  { %664 = shalt.err (!%p661_p7)
}
  0x11   :  { %s756_s28 = smov 16   ;;  %s757_s29 = smov 1  }
  0x12   :  { %24 = dma.hbm_to_vmem [thread:$0]  %s941_s0, 128, %s19_s19, [#allocation4], %s756_s28, %s756_s28, %s757_s29  }
  0x13   :  { %s758_s7 = smov [#allocation6]   ;;  %s665_s11 = scalar_lea.hbm %s944_s3, 512 }
  0x14   :  { %s34_s8 = sshll.u32 %s758_s7, 4  ;;  %p666_p8 = scmp.ne.s32.totalorder %s944_s3, %s665_s11  ;;  %s35_s8 = int_to_ptr.vmem [resolvable:$true] %s34_s8 }
  0x15   :  { %p669_p9 = scmp.lt.u32.totalorder %s665_s11, %s944_s3 }
  0x17   :  { %p671_p10 = pnand %p669_p9, %p666_p8 }
  0x19   :  { %674 = shalt.err (!%p671_p10)
}
  0x1a   :  { %s675_s16 = scalar_lea.vmem %s35_s8, 512  ;;  %p680_p12 = scmp.lt.s32.totalorder %s35_s8, %s35_s8 }
  0x1b   :  { %p676_p11 = scmp.ne.s32.totalorder %s35_s8, %s675_s16  ;;  %p681_p13 = scmp.lt.s32.totalorder %s675_s16, %s675_s16 }
  0x1d   :  { %p682_p0 = por %p681_p13, %p680_p12 }
  0x1f   :  { %p683_p1 = pnand %p682_p0, %p676_p11 }
  0x21   :  { %686 = shalt.err (!%p683_p1)
}
  0x22   :  { %s759_s0 = smov 128   ;;  %s760_s17 = smov 8  }
  0x23   :  { %40 = dma.hbm_to_vmem [thread:$0]  %s944_s3, 512, %s35_s8, [#allocation7], %s759_s0, %s759_s0, %s760_s17  }
  0x24   :  { %729 = dma.done.wait [#allocation4], 128  }
  0x25   :  { %730 = vsyncadd [#allocation4], 4294967168 }
  0x26   :  { %731 = dma.done.wait [#allocation7], 512  }
  0x27   :  { %732 = vsyncadd [#allocation7], 4294966784  ;;  %v761_v0 = vmov 0.0   ;;  %vm762_vm0 = vmmov 0   ;;  %v763_v1 = vmov 1966171168   ;;  %v75_v3 = vlaneseq }
  0x28   :  { %536 = vmatprep.subr.bf16.mxu0 %v761_v0  ;;  %538 = vmatprep.mubr.msk.bf16.mxu0 %vm762_vm0, %v761_v0  ;;  %v73_v2 = vunpack.c.l.s4 %v763_v1  ;;  %v835_v6 = vld [vmem:[%s942_s1] sm:$0x3]  ;;  %v837_v7 = vld [vmem:[#allocation6] sm:$0xff]  ;;  %v841_v9 = vld [vmem:[#allocation6 + $0x10] sm:$0xff]  ;;  %vm123_vm1 = vcmask 130048   ;;  %v860_v61 = vmov 0.0  }
  0x29   :  { %v76_v5 = vshrl.u32 %v75_v3, 7  ;;  %v839_v8 = vld [vmem:[#allocation6 + $0x8] sm:$0xff]  ;;  %v843_v10 = vld [vmem:[#allocation6 + $0x18] sm:$0xff]  ;;  %v764_v34 = vmov 1983009808   ;;  %v862_v62 = vmov 0.0  }
  0x2a   :  { %v74_v4 = vunpack.c.0.s8 %v73_v2  ;;  %v619_v11 = vld [vmem:[%s943_s2] sm:$0xff]   ;;  %v50_v12 = vld [vmem:[#allocation3] sm:$0x1]  ;;  %v51_v14 = vld [vmem:[#allocation3 + $0x1] sm:$0x1]  ;;  %v172_v35 = vunpack.c.l.s4 %v764_v34  ;;  %v864_v63 = vmov 0.0  }
  0x2b   :  { %v52_v15 = vld [vmem:[#allocation3 + $0x2] sm:$0x1]  ;;  %v53_v16 = vld [vmem:[#allocation3 + $0x3] sm:$0x1]  ;;  %537 = vmatpush3.bf16.msra.mxu0 %v619_v11  ;;  %v54_v17 = vld [vmem:[#allocation3 + $0x4] sm:$0x1]  ;;  %v68_v20 = vcombine.low %v50_v12, %v51_v14 }
  0x2c   :  { %v848_v13 = vsub.s32 %v74_v4, %v76_v5  ;;  %v55_v18 = vld [vmem:[#allocation3 + $0x5] sm:$0x1]  ;;  %v56_v19 = vld [vmem:[#allocation3 + $0x6] sm:$0x1]  ;;  %v69_v21 = vcombine.low %v52_v15, %v53_v16  ;;  %v57_v22 = vld [vmem:[#allocation3 + $0x7] sm:$0x1]  ;;  %v173_v36 = vunpack.c.0.s8 %v172_v35 }
  0x2d   :  { %v70_v23 = vcombine.low %v54_v17, %v55_v18  ;;  %v71_v24 = vcombine.low %v56_v19, %v57_v22  ;;  %v520_v39 = vld [vmem:[%s945_s4] ss:$0 sm:$0xff]  ;;  %v866_v0 = vmov 0.0   ;;  %s868_s4 = smov 0  }
  0x2e   :  { %v78_v25 = vrot.slane %v68_v20, %v848_v13  ;;  %v85_v26 = vrot.slane %v69_v21, %v848_v13  ;;  %v176_v37 = vsub.s32 %v173_v36, %v76_v5 }
  0x2f   :  { %v92_v27 = vrot.slane %v70_v23, %v848_v13  ;;  %v99_v28 = vrot.slane %v71_v24, %v848_v13 }
  0x30   :  { %v100_v29 = vcombine.low %v78_v25, %v85_v26 }
  0x31   :  { %v101_v30 = vcombine.low %v92_v27, %v99_v28 }
  0x32   :  { %v108_v31 = vrot.slane %v100_v29, %v848_v13 }
  0x33   :  { %v115_v32 = vrot.slane %v101_v30, %v848_v13 }
  0x35   :  { %v116_v33 = vcombine.low %v108_v31, %v115_v32 }
  0x37   :  { %539 = vmatmul.mubr.msk.bf16.vlgmr.msra.gmra.mrb[0].mxu0 %vm123_vm1, %v116_v33 }
 0x10a   :  { %v161_v38 = vpop.f32.mrb[0].mxu0 }
 0x10b   :  { %v170_v40 = vcombine.high %v161_v38, %v161_v38  ;;  %v177_v41 = vrot.slane %v161_v38, %v176_v37  ;;  %v540_v42 = vpop.f32.mrb[1].mxu0 }
 0x10c   :  { %v164_v43 = vpop.f32.mrb[2].mxu0 }
 0x10d   :  { %v184_v44 = vrot.slane %v170_v40, %v176_v37  ;;  %v185_v45 = vcombine.high %v177_v41, %v177_v41  ;;  %v219_v46 = vadd.f32 %v520_v39, %v177_v41  ;;  %v187_v47 = vcombine.high %v164_v43, %v164_v43  ;;  %v541_v48 = vpop.f32.mrb[3].mxu0 }
 0x10e   :  { %v194_v49 = vrot.slane %v164_v43, %v176_v37 }
 0x10f   :  { %v186_v50 = vcombine.high %v184_v44, %v184_v44  ;;  %v220_v51 = vadd.f32 %v520_v39, %v185_v45  ;;  %v221_v52 = vadd.f32 %v520_v39, %v184_v44  ;;  %227 = vst [vmem:[#allocation2] sm:$0x3] %v219_v46  ;;  %v201_v53 = vrot.slane %v187_v47, %v176_v37 }
 0x110   :  { %v202_v54 = vcombine.high %v194_v49, %v194_v49  ;;  %v223_v55 = vadd.f32 %v520_v39, %v194_v49 }
 0x111   :  { %v222_v56 = vadd.f32 %v520_v39, %v186_v50  ;;  %228 = vst [vmem:[#allocation2 + $0x2] sm:$0x3] %v220_v51  ;;  %229 = vst [vmem:[#allocation2 + $0x4] sm:$0x3] %v221_v52  ;;  %v203_v57 = vcombine.high %v201_v53, %v201_v53  ;;  %v225_v58 = vadd.f32 %v520_v39, %v201_v53 }
 0x112   :  { %v224_v59 = vadd.f32 %v520_v39, %v202_v54  ;;  %231 = vst [vmem:[#allocation2 + $0x8] sm:$0x3] %v223_v55 }
 0x113   :  { %230 = vst [vmem:[#allocation2 + $0x6] sm:$0x3] %v222_v56  ;;  %v226_v60 = vadd.f32 %v520_v39, %v203_v57  ;;  %233 = vst [vmem:[#allocation2 + $0xc] sm:$0x3] %v225_v58 }
 0x114   :  { %232 = vst [vmem:[#allocation2 + $0xa] sm:$0x3] %v224_v59 }
 0x115   :  { %234 = vst [vmem:[#allocation2 + $0xe] sm:$0x3] %v226_v60 }
 0x116 LB: > { %v554_v1 = vpack.c.bf16 %v839_v8, %v837_v7  ;;  %v765_v2 = vmov 0.0|0.0   ;;  %s766_s23 = smov 96   ;;  %v557_v3 = vpack.c.bf16 %v843_v10, %v841_v9  ;;  %vm767_vm2 = vmmov 0   ;;  %s769_s24 = smov 48   ;;  %s753_s4 = sphi %s868_s4, %s245_s4   ;;  %v749_v0 = vphi %v866_v0, %v461_v0   ;;  %v745_v63 = vphi %v864_v63, %v464_v63   ;;  %v741_v62 = vphi %v862_v62, %v472_v62   ;;  %v737_v61 = vphi %v860_v61, %v475_v61  }
 0x117   : > { %553 = vmatprep.subr.bf16.mxu0 %v765_v2  ;;  %252 = vrot.lane.b32.xlu0 %v749_v0, %s766_s23  ;;  %v768_v4 = vmov 0.0   ;;  %vm260_vm3 = vcmask 261120   ;;  %s894_s25 = ssub.s32 7, %s753_s4  ;;  %s522_s26 = sshll.u32 %s753_s4, 1  ;;  %v770_v20 = vmov 0   ;;  %v342_v29 = vstv %s753_s4 }
 0x118   : > { %555 = vmatpush3.bf16.msra.mxu0 %v554_v1  ;;  %550 = vmatprep.mubr.msk.f32.mxu0 %vm767_vm2, %v768_v4  ;;  %s523_s27 = sshll.u32 %s894_s25, 1  ;;  %s335_s30 = scalar_lea.vmem [#allocation2], %s522_s26  ;;  %v346_v30 = vstv %s894_s25  ;;  %vm343_vm4 = vcmp.gt.s32.totalorder %v835_v6, %v342_v29  ;;  %vm424_vm6 = vcmask 122880  }
 0x119   : > { %556 = vmatprep.subr.bf16.mxu0 %v765_v2  ;;  %s339_s6 = scalar_lea.vmem [#allocation2], %s523_s27  ;;  %620 = vset.pattern.permute.xlu0 %v770_v20  ;;  %s771_s7 = smov 80   ;;  %vm347_vm5 = vcmp.gt.s32.totalorder %v835_v6, %v346_v30  ;;  %v524_v32 = vsel %vm343_vm4, 1.0, %v768_v4 }
 0x11a   : > { %626 = vset.pattern.permute.xlu1 %v770_v20  ;;  %v525_v33 = vsel %vm347_vm5, 1.0, %v768_v4  ;;  %s772_s8 = smov 16   ;;  %v454_v40 = vsub.f32 1.0, %v524_v32  ;;  %s773_s9 = smov 32  }
 0x11b   : > { %256 = vrot.lane.b32.xlu0 %v741_v62, %s769_s24  ;;  %v621_v36 = vpack.i.bf16 %v525_v33, %v524_v32  ;;  %v465_v51 = vsub.f32 1.0, %v525_v33  ;;  %s423_s10 = scalar_lea.vmem [#allocation8], %s753_s4  ;;  %s499_s11 = scalar_lea.vmem [#allocation8], %s894_s25 }
 0x11c   : > { %558 = vmatpush3.bf16.msra.mxu0 %v557_v3  ;;  %v336_v14 = vld [vmem:[%s335_s30] sm:$0x3]  ;;  %s245_s4 = sadd.s32 1, %s753_s4  }
 0x11d   : > { %v340_v16 = vld [vmem:[%s339_s6] sm:$0x3]  ;;  %p242_p2 = scmp.ge.s32.totalorder %s245_s4, 8  }
 0x11e   :  { %s774_s12 = smov (%p242_p2), [#allocation8]  }
 0x11f   :  { %s481_s13 = sshll.u32 (%p242_p2), %s774_s12, 4  ;;  %s482_s13 = int_to_ptr.vmem [resolvable:$true] %s481_s13 }
 0x120   :  { %s687_s14 = scalar_lea.vmem (%p242_p2), %s482_s13, 256  ;;  %p692_p4 = scmp.lt.s32.totalorder (%p242_p2), %s482_s13, %s482_s13 }
 0x121   :  { %p688_p3 = scmp.ne.s32.totalorder (%p242_p2), %s482_s13, %s687_s14  ;;  %p693_p5 = scmp.lt.s32.totalorder (%p242_p2), %s687_s14, %s687_s14 }
 0x123   :  { %p694_p6 = por (%p242_p2), %p693_p5, %p692_p4 }
 0x125   :  { %p695_p7 = pnand (%p242_p2), %p694_p6, %p688_p3 }
 0x189   : > { %v253_v5 = vpop.permute.xlu0 %252 }
 0x18d   : > { %v257_v11 = vpop.permute.xlu0 %256 }
 0x18e   : > { %v259_v12 = vsel %vm123_vm1, %v253_v5, %v257_v11 }
 0x18f   : > { %551 = vmatmul.mubr.msk.f32.vlgmr.msra.gmra.mrb[0].mxu0 %vm260_vm3, %v259_v12 }
 0x262   : > { %v330_v15 = vpop.f32.mrb[0].mxu0 }
 0x263   : > { %v337_v17 = vadd.f32 %v336_v14, %v330_v15  ;;  %v552_v18 = vpop.f32.mrb[1].mxu0  ;;  %v341_v19 = vadd.f32 %v340_v16, %v330_v15 }
 0x265   : > { %627 = vtanh.f32 %v337_v17  ;;  %v526_v23 = vmul.f32 -1.442695, %v337_v17  ;;  %v527_v24 = vmul.f32 -1.442695, %v341_v19 }
 0x266   : > { %629 = vtanh.f32 %v341_v19 }
 0x267   : > { %631 = vpow2.f32 %v526_v23 }
 0x268   : > { %633 = vpow2.f32 %v527_v24 }
 0x26f   : > { %v628_v21 = vpop.eup %627 }
 0x270   : > { %359 = vrot.lane.b32.xlu1 %v628_v21, %s771_s7  ;;  %v630_v22 = vpop.eup %629 }
 0x271   : > { %v632_v25 = vpop.eup %631 }
 0x272   : > { %v353_v26 = vadd.f32 1.0, %v632_v25  ;;  %v634_v27 = vpop.eup %633 }
 0x273   : > { %v377_v28 = vadd.f32 1.0, %v634_v27 }
 0x274   : > { %383 = vrot.lane.b32.xlu1 %v630_v22, %s771_s7  ;;  %635 = vrcp.f32 %v353_v26 }
 0x275   : > { %637 = vrcp.f32 %v377_v28 }
 0x27e   : > { %v636_v31 = vpop.eup %635 }
 0x27f   : > { %v638_v37 = vpop.eup %637  ;;  %v357_v41 = vmul.f32 %v745_v63, %v636_v31 }
 0x280   : > { %v381_v44 = vmul.f32 %v737_v61, %v638_v37 }
 0x2e2   : > { %v360_v34 = vpop.permute.xlu1 %359 }
 0x2e3   : > { %v362_v35 = vmul.f32 %v636_v31, %v360_v34 }
 0x2e5   : > { %364 = vrot.lane.b32.xlu0 %v362_v35, %s772_s8 }
 0x2e6   : > { %v384_v38 = vpop.permute.xlu1 %383 }
 0x2e7   : > { %v386_v39 = vmul.f32 %v638_v37, %v384_v38 }
 0x2e9   : > { %388 = vrot.lane.b32.xlu1 %v386_v39, %s772_s8  ;;  %622 = vperm.xlu0 %620, %v621_v36  }
 0x2ed   : > { %457 = vperm.xlu0 %620, %v454_v40  }
 0x357   : > { %v365_v42 = vpop.permute.xlu0 %364 }
 0x358   : > { %v367_v43 = vadd.f32 %v365_v42, %v357_v41 }
 0x35a   : > { %639 = vtanh.f32 %v367_v43 }
 0x35b   : > { %v389_v45 = vpop.permute.xlu1 %388 }
 0x35c   : > { %v391_v46 = vadd.f32 %v389_v45, %v381_v44 }
 0x35e   : > { %641 = vtanh.f32 %v391_v46 }
 0x364   : > { %v640_v47 = vpop.eup %639 }
 0x365   : > { %370 = vrot.lane.b32.xlu1 %v640_v47, %s772_s8 }
 0x368   : > { %v642_v48 = vpop.eup %641  ;;  %v623_v49 = vpop.permute.xlu0 %622 }
 0x369   : > { %v624_v50 = vunpack.i.l.bf16 %v623_v49  ;;  %394 = vrot.lane.b32.xlu1 %v642_v48, %s772_s8  ;;  %v625_v60 = vunpack.i.h.bf16 %v623_v49 }
 0x36b   : > { %v462_v53 = vmul.f32 %v624_v50, %v367_v43  ;;  %v473_v16 = vmul.f32 %v625_v60, %v391_v46 }
 0x36c   : > { %v458_v52 = vpop.permute.xlu0 %457 }
 0x36d   : > { %v463_v54 = vmul.f32 %v745_v63, %v458_v52  ;;  %468 = vperm.xlu1 %626, %v465_v51   ;;  %v460_v56 = vmul.f32 %v749_v0, %v458_v52 }
 0x36f   : > { %v464_v63 = vadd.f32 %v463_v54, %v462_v53  }
 0x3d7   : > { %v371_v55 = vpop.permute.xlu1 %370 }
 0x3d8   : > { %v373_v57 = vmul.f32 %v636_v31, %v371_v55 }
 0x3da   : > { %v403_v58 = vmul.f32 %v624_v50, %v373_v57 }
 0x3db   : > { %v395_v59 = vpop.permute.xlu1 %394 }
 0x3dc   : > { %v404_v1 = vpack.c.bf16 %v403_v58, %v403_v58  ;;  %v461_v0 = vadd.f32 %v460_v56, %v403_v58   ;;  %v397_v2 = vmul.f32 %v638_v37, %v395_v59 }
 0x3de   : > { %v431_v3 = vmul.f32 %v625_v60, %v397_v2  ;;  %v412_v4 = vrot.slane %v404_v1, %v848_v13 }
 0x3e0   : > { %v432_v5 = vpack.c.bf16 %v431_v3, %v431_v3  ;;  %v419_v11 = vrot.slane %v412_v4, %v848_v13 }
 0x3e2   : > { %420 = vrot.lane.b32.xlu0 %v419_v11, %s766_s23  ;;  %v440_v12 = vrot.slane %v432_v5, %v848_v13 }
 0x3e4   : > { %v447_v14 = vrot.slane %v440_v12, %v848_v13 }
 0x3e6   : > { %448 = vrot.lane.b32.xlu1 %v447_v14, %s773_s9 }
 0x3ec   : > { %v469_v15 = vpop.permute.xlu1 %468 }
 0x3ed   : > { %v471_v17 = vmul.f32 %v741_v62, %v469_v15  ;;  %v474_v18 = vmul.f32 %v737_v61, %v469_v15 }
 0x3ef   : > { %v472_v62 = vadd.f32 %v471_v17, %v431_v3   ;;  %v475_v61 = vadd.f32 %v474_v18, %v473_v16  }
 0x453   :  { %244 = sbr.rel (!%p242_p2) target bundleno = 278 (0x116), region = 59 }
 0x454   : > { %v421_v19 = vpop.permute.xlu0 %420 }
 0x455   : > { %425 = vst.msk [vmem:[%s423_s10] sm:$0x1] %vm424_vm6, %v421_v19 }
 0x458   : > { %v449_v20 = vpop.permute.xlu1 %448 }
 0x459   : > { %528 = vst.msk [vmem:[%s499_s11 + $0x8] sm:$0x1] %vm424_vm6, %v449_v20 }
 0x45a   :  { %698 = shalt.err (!%p695_p7)
}
 0x45b   :  { %s699_s0 = scalar_lea.hbm %s946_s5, 256 }
 0x45c   :  { %p700_p8 = scmp.ne.s32.totalorder %s946_s5, %s699_s0  ;;  %p703_p9 = scmp.lt.u32.totalorder %s699_s0, %s946_s5 }
 0x45e   :  { %p705_p10 = pnand %p703_p9, %p700_p8 }
 0x460   :  { %708 = shalt.err (!%p705_p10)
}
 0x461   :  { %487 = dma.vmem_to_hbm [thread:$0]  %s482_s13, 256, %s946_s5, [#allocation5], %s756_s28, %s756_s28, %s757_s29  }
 0x462   :  { %733 = dma.done.wait [#allocation5], 256  }
 0x463   :  { %734 = vsyncadd [#allocation5], 4294967040 }
 0x464   :  { %491 = vsyncpa [#allocation4], 1 }
 0x465   :  { %492 = vsyncpa [#allocation7], 1 }
 0x466   :  { %493 = vsyncpa [#allocation5], 1 }

</bundles_post_ra>
